<compile_context>
chip_gen: v6e
topology: v6e:2x2x1
jax: 0.10.0
libtpu: 0.0.40
codegen_flags: <defaults>
</compile_context>

<pallas_src>
import jax
import jax.numpy as jnp
from jax.experimental import pallas as pl
from jax.experimental.pallas import tpu as pltpu


def _relu_maxpool_kernel(x_ref, o_ref):
    # x_ref: (TC, H, W) block in VMEM; o_ref: (TC, H-1, W-1)
    x = x_ref[...]
    # Separable 2x2 stride-1 max pool.
    mw = jnp.maximum(x[:, :, :-1], x[:, :, 1:])     # (TC, H,   W-1)
    mh = jnp.maximum(mw[:, :-1, :], mw[:, 1:, :])   # (TC, H-1, W-1)
    # ReLU folded after the pool (exact: max is monotone); zero in input dtype.
    zero = jnp.zeros((), dtype=mh.dtype)
    o_ref[...] = jnp.maximum(mh, zero)


def block_type2_forward(x, *, max_planes_per_step: int = 512):
    """x: (N, C, H, W) -> (N, C, H-1, W-1), same dtype."""
    N, C, H, W = x.shape
    nc = N * C
    x2 = x.reshape(nc, H, W)

    # Chunk many planes per grid step to amortize per-step pipeline overhead.
    # (For real workloads nc >> 512 this yields many "parallel" steps, which
    # also lets v7x's two TensorCores both stream from HBM.)
    tc = min(nc, max_planes_per_step)
    grid = (pl.cdiv(nc, tc),)

    out = pl.pallas_call(
        _relu_maxpool_kernel,
        out_shape=jax.ShapeDtypeStruct((nc, H - 1, W - 1), x.dtype),
        grid_spec=pl.GridSpec(
            grid=grid,
            in_specs=[pl.BlockSpec((tc, H, W), lambda i: (i, 0, 0))],
            out_specs=pl.BlockSpec((tc, H - 1, W - 1), lambda i: (i, 0, 0)),
        ),
        compiler_params=pltpu.CompilerParams(
            dimension_semantics=("parallel",)),
    )(x2)

    return out.reshape(N, C, H - 1, W - 1)


def _reference(x):
    # Pure-JAX reference: relu then 2x2 stride-1 max pool.
    r = jnp.maximum(x, 0.0)
    a = r[:, :, :-1, :-1]
    b = r[:, :, :-1, 1:]
    c = r[:, :, 1:, :-1]
    d = r[:, :, 1:, 1:]
    return jnp.maximum(jnp.maximum(a, b), jnp.maximum(c, d))


if __name__ == "__main__":
    key = jax.random.PRNGKey(0)
    N, C, H, W = 2, 4, 16, 16  # in_ch = 4
    x = jax.random.normal(key, (N, C, H, W), dtype=jnp.float32)

    y = block_type2_forward(x)
    y = jax.block_until_ready(y)

    y_ref = _reference(x)
    assert y.shape == (N, C, H - 1, W - 1), y.shape
    assert jnp.allclose(y, y_ref, atol=1e-6), "mismatch vs reference"

    print("KERNEL_OK")
</pallas_src>

<mosaic_0001>
module attributes {stable_mosaic.version = 11 : i64} {
  func.func @_relu_maxpool_kernel(%arg0: i32, %arg1: memref<8x16x16xf32, #tpu.memory_space<vmem>>, %arg2: memref<8x15x15xf32, #tpu.memory_space<vmem>>) attributes {dimension_semantics = [#tpu.dimension_semantics<parallel>], iteration_bounds = array<i64: 1>, scalar_prefetch = 0 : i64, scratch_operands = 0 : i64, tpu.core_type = #tpu.core_type<tc>, window_params = [{transform_indices = @transform_0, window_bounds = array<i64: 8, 16, 16>}, {transform_indices = @transform_1, window_bounds = array<i64: 8, 15, 15>}]} {
    %c0 = arith.constant 0 : index
    %c0_0 = arith.constant 0 : index
    %c0_1 = arith.constant 0 : index
    %0 = vector.load %arg1[%c0, %c0_0, %c0_1] : memref<8x16x16xf32, #tpu.memory_space<vmem>>, vector<8x16x16xf32>
    %1 = vector.extract_strided_slice %0 {offsets = [0, 0, 0], sizes = [8, 16, 15], strides = [1, 1, 1]} : vector<8x16x16xf32> to vector<8x16x15xf32>
    %2 = vector.extract_strided_slice %0 {offsets = [0, 0, 1], sizes = [8, 16, 15], strides = [1, 1, 1]} : vector<8x16x16xf32> to vector<8x16x15xf32>
    %3 = arith.maximumf %1, %2 : vector<8x16x15xf32>
    %4 = vector.extract_strided_slice %3 {offsets = [0, 0, 0], sizes = [8, 15, 15], strides = [1, 1, 1]} : vector<8x16x15xf32> to vector<8x15x15xf32>
    %5 = vector.extract_strided_slice %3 {offsets = [0, 1, 0], sizes = [8, 15, 15], strides = [1, 1, 1]} : vector<8x16x15xf32> to vector<8x15x15xf32>
    %6 = arith.maximumf %4, %5 : vector<8x15x15xf32>
    %cst = arith.constant 0.000000e+00 : f32
    %7 = vector.broadcast %cst : f32 to vector<8x15x15xf32>
    %8 = arith.maximumf %6, %7 : vector<8x15x15xf32>
    %c0_2 = arith.constant 0 : index
    %c0_3 = arith.constant 0 : index
    %c0_4 = arith.constant 0 : index
    %9 = vector.load %arg2[%c0_2, %c0_3, %c0_4] : memref<8x15x15xf32, #tpu.memory_space<vmem>>, vector<8x15x15xf32>
    tpu.vector_store %arg2[%c0_2, %c0_3, %c0_4], %8 {strides = array<i32>} : memref<8x15x15xf32, #tpu.memory_space<vmem>>, vector<8x15x15xf32>,
    return
  }
  func.func @transform_0(%arg0: i32) -> (i32, i32, i32) {
    %c0_i32 = arith.constant 0 : i32
    %c0_i32_0 = arith.constant 0 : i32
    %c0_i32_1 = arith.constant 0 : i32
    return %arg0, %c0_i32, %c0_i32_0 : i32, i32, i32
  }
  func.func @transform_1(%arg0: i32) -> (i32, i32, i32) {
    %c0_i32 = arith.constant 0 : i32
    %c0_i32_0 = arith.constant 0 : i32
    %c0_i32_1 = arith.constant 0 : i32
    return %arg0, %c0_i32, %c0_i32_0 : i32, i32, i32
  }
}

</mosaic_0001>

<bundles_post_ra>
// kernel: tpu_custom_call.1
= control target key start
LH: loop header
LB: loop body
LE: loop exit
PB: predicated region body
PF: predicated region fallthrough
CT: control target
= control target key end

     0   :  { %6 = vsyncpa [#allocation3], 0  ;;  %s256_s6 = smov [#allocation2]   ;;  %s377_s0 = inlined_call_operand.hbm [shape: f32[8,16,16], index: 0, kind: input, shape index: {}]   ;;  %s378_s1 = inlined_call_operand.vmem [shape: f32[8,15,15], index: 1, kind: output, shape index: {}]  }
   0x1   :  { %s12_s7 = sshll.u32 %s256_s6, 4  ;;  %s13_s7 = int_to_ptr.vmem [resolvable:$true] %s12_s7 }
   0x2   :  { %s242_s8 = scalar_lea.vmem %s13_s7, 2048  ;;  %p247_p1 = scmp.lt.s32.totalorder %s13_s7, %s13_s7 }
   0x3   :  { %p243_p0 = scmp.ne.s32.totalorder %s13_s7, %s242_s8  ;;  %p248_p2 = scmp.lt.s32.totalorder %s242_s8, %s242_s8 }
   0x5   :  { %p249_p3 = por %p248_p2, %p247_p1 }
   0x7   :  { %p250_p4 = pnand %p249_p3, %p243_p0 }
   0x9   :  { %253 = shalt.err (!%p250_p4)
}
   0xa   :  { %s257_s9 = smov 128   ;;  %s258_s10 = smov 8  }
   0xb   :  { %18 = dma.hbm_to_vmem [thread:$0]  %s377_s0, 2048, %s13_s7, [#allocation3], %s257_s9, %s257_s9, %s258_s10  }
   0xc   :  { %254 = dma.done.wait [#allocation3], 2048  }
   0xd   :  { %255 = vsyncadd [#allocation3], 4294965248  ;;  %v24_v0 = vld [vmem:[#allocation2 + $0x10] sm:$0xff]  ;;  %v22_v1 = vld [vmem:[#allocation2] sm:$0xff]  ;;  %s259_s13 = smov 127   ;;  %vm134_vm0 = vcmask 1046528  }
   0xe   :  { %58 = vrot.lane.b32.xlu1 %v24_v0, %s259_s13  ;;  %54 = vrot.lane.b32.xlu0 %v22_v1, %s259_s13  ;;  %v25_v2 = vld [vmem:[#allocation2 + $0x18] sm:$0xff]  ;;  %v23_v3 = vld [vmem:[#allocation2 + $0x8] sm:$0xff]  ;;  %v26_v5 = vld [vmem:[#allocation2 + $0x20] sm:$0xff]  ;;  %vm209_vm1 = vcmask 120832   ;;  %vm207_vm2 = vcmask 121856  }
   0xf   :  { %v27_v4 = vld [vmem:[#allocation2 + $0x28] sm:$0xff]  ;;  %v29_v6 = vld [vmem:[#allocation2 + $0x38] sm:$0xff]  ;;  %v28_v7 = vld [vmem:[#allocation2 + $0x30] sm:$0xff] }
  0x10   :  { %v273_v8 = vld [vmem:[#allocation2 + $0x48] sm:$0xff]  ;;  %v275_v9 = vld [vmem:[#allocation2 + $0x40] sm:$0xff]  ;;  %v279_v10 = vld [vmem:[#allocation2 + $0x58] sm:$0xff] }
  0x11   :  { %v281_v11 = vld [vmem:[#allocation2 + $0x50] sm:$0xff]  ;;  %v285_v12 = vld [vmem:[#allocation2 + $0x68] sm:$0xff]  ;;  %v287_v13 = vld [vmem:[#allocation2 + $0x60] sm:$0xff] }
  0x12   :  { %60 = vrot.lane.b32.xlu1 %v25_v2, %s259_s13  ;;  %56 = vrot.lane.b32.xlu0 %v23_v3, %s259_s13  ;;  %v291_v14 = vld [vmem:[#allocation2 + $0x78] sm:$0xff]  ;;  %v293_v15 = vld [vmem:[#allocation2 + $0x70] sm:$0xff] }
  0x16   :  { %64 = vrot.lane.b32.xlu1 %v27_v4, %s259_s13  ;;  %62 = vrot.lane.b32.xlu0 %v26_v5, %s259_s13 }
  0x1a   :  { %68 = vrot.lane.b32.xlu1 %v29_v6, %s259_s13  ;;  %66 = vrot.lane.b32.xlu0 %v28_v7, %s259_s13 }
  0x1e   :  { %72 = vrot.lane.b32.xlu1 %v273_v8, %s259_s13  ;;  %70 = vrot.lane.b32.xlu0 %v275_v9, %s259_s13 }
  0x22   :  { %76 = vrot.lane.b32.xlu1 %v279_v10, %s259_s13  ;;  %74 = vrot.lane.b32.xlu0 %v281_v11, %s259_s13 }
  0x26   :  { %80 = vrot.lane.b32.xlu1 %v285_v12, %s259_s13  ;;  %78 = vrot.lane.b32.xlu0 %v287_v13, %s259_s13 }
  0x2a   :  { %84 = vrot.lane.b32.xlu1 %v291_v14, %s259_s13  ;;  %82 = vrot.lane.b32.xlu0 %v293_v15, %s259_s13 }
  0x80   :  { %v59_v16 = vpop.permute.xlu1 %58  ;;  %v55_v17 = vpop.permute.xlu0 %54 }
  0x81   :  { %v104_v18 = vmax.f32 %v24_v0, %v59_v16  ;;  %v102_v19 = vmax.f32 %v22_v1, %v55_v17 }
  0x83   :  { %v138_v24 = vrot.slane %v104_v18, 1  ;;  %v135_v25 = vrot.slane %v102_v19, 1 }
  0x84   :  { %v61_v20 = vpop.permute.xlu1 %60  ;;  %v57_v21 = vpop.permute.xlu0 %56 }
  0x85   :  { %v105_v22 = vmax.f32 %v25_v2, %v61_v20  ;;  %v103_v23 = vmax.f32 %v23_v3, %v57_v21 }
  0x87   :  { %v139_v26 = vrot.slane %v105_v22, 1  ;;  %v136_v27 = vrot.slane %v103_v23, 1 }
  0x88   :  { %v65_v28 = vpop.permute.xlu1 %64  ;;  %v63_v29 = vpop.permute.xlu0 %62 }
  0x89   :  { %v140_v30 = vsel %vm134_vm0, %v138_v24, %v139_v26  ;;  %v178_v31 = vmax.f32 %v105_v22, %v139_v26  ;;  %v137_v32 = vsel %vm134_vm0, %v135_v25, %v136_v27  ;;  %v176_v33 = vmax.f32 %v103_v23, %v136_v27 }
  0x8a   :  { %v177_v34 = vmax.f32 %v104_v18, %v140_v30  ;;  %v175_v35 = vmax.f32 %v102_v19, %v137_v32  ;;  %v107_v36 = vmax.f32 %v27_v4, %v65_v28  ;;  %v106_v37 = vmax.f32 %v26_v5, %v63_v29 }
  0x8b   :  { %v194_v38 = vmax.f32 %v178_v31, 0.0  ;;  %v192_v39 = vmax.f32 %v176_v33, 0.0 }
  0x8c   :  { %v193_v40 = vmax.f32 %v177_v34, 0.0  ;;  %v191_v41 = vmax.f32 %v175_v35, 0.0  ;;  %v142_v42 = vrot.slane %v107_v36, 1  ;;  %v141_v43 = vrot.slane %v106_v37, 1  ;;  %v69_v44 = vpop.permute.xlu1 %68  ;;  %v67_v45 = vpop.permute.xlu0 %66 }
  0x8d   :  { %212 = vst.msk [vmem:[%s378_s1 + $0x18] sm:$0x7f] %vm209_vm1, %v194_v38  ;;  %210 = vst.msk [vmem:[%s378_s1 + $0x8] sm:$0x7f] %vm209_vm1, %v192_v39  ;;  %v109_v46 = vmax.f32 %v29_v6, %v69_v44  ;;  %v108_v47 = vmax.f32 %v28_v7, %v67_v45 }
  0x8e   :  { %211 = vst.msk [vmem:[%s378_s1 + $0x10] sm:$0xff] %vm207_vm2, %v193_v40  ;;  %208 = vst.msk [vmem:[%s378_s1] sm:$0xff] %vm207_vm2, %v191_v41  ;;  %v180_v48 = vmax.f32 %v107_v36, %v142_v42  ;;  %v143_v49 = vsel %vm134_vm0, %v141_v43, %v142_v42 }
  0x8f   :  { %v179_v50 = vmax.f32 %v106_v37, %v143_v49  ;;  %v145_v51 = vrot.slane %v109_v46, 1  ;;  %v144_v52 = vrot.slane %v108_v47, 1 }
  0x90   :  { %v196_v53 = vmax.f32 %v180_v48, 0.0  ;;  %v73_v54 = vpop.permute.xlu1 %72  ;;  %v71_v55 = vpop.permute.xlu0 %70 }
  0x91   :  { %v195_v56 = vmax.f32 %v179_v50, 0.0  ;;  %v182_v57 = vmax.f32 %v109_v46, %v145_v51  ;;  %v146_v58 = vsel %vm134_vm0, %v144_v52, %v145_v51  ;;  %v111_v59 = vmax.f32 %v273_v8, %v73_v54 }
  0x92   :  { %214 = vst.msk [vmem:[%s378_s1 + $0x28] sm:$0x7f] %vm209_vm1, %v196_v53  ;;  %v181_v60 = vmax.f32 %v108_v47, %v146_v58  ;;  %v110_v61 = vmax.f32 %v275_v9, %v71_v55 }
  0x93   :  { %213 = vst.msk [vmem:[%s378_s1 + $0x20] sm:$0xff] %vm207_vm2, %v195_v56  ;;  %v198_v62 = vmax.f32 %v182_v57, 0.0  ;;  %v148_v63 = vrot.slane %v111_v59, 1 }
  0x94   :  { %v197_v0 = vmax.f32 %v181_v60, 0.0  ;;  %v147_v1 = vrot.slane %v110_v61, 1  ;;  %v77_v2 = vpop.permute.xlu1 %76  ;;  %v75_v3 = vpop.permute.xlu0 %74 }
  0x95   :  { %216 = vst.msk [vmem:[%s378_s1 + $0x38] sm:$0x7f] %vm209_vm1, %v198_v62  ;;  %v184_v4 = vmax.f32 %v111_v59, %v148_v63  ;;  %v113_v5 = vmax.f32 %v279_v10, %v77_v2  ;;  %v112_v6 = vmax.f32 %v281_v11, %v75_v3 }
  0x96   :  { %215 = vst.msk [vmem:[%s378_s1 + $0x30] sm:$0xff] %vm207_vm2, %v197_v0  ;;  %v149_v7 = vsel %vm134_vm0, %v147_v1, %v148_v63 }
  0x97   :  { %v200_v8 = vmax.f32 %v184_v4, 0.0  ;;  %v183_v9 = vmax.f32 %v110_v61, %v149_v7  ;;  %v151_v16 = vrot.slane %v113_v5, 1  ;;  %v150_v17 = vrot.slane %v112_v6, 1 }
  0x98   :  { %v81_v18 = vpop.permute.xlu1 %80  ;;  %v79_v19 = vpop.permute.xlu0 %78 }
  0x99   :  { %218 = vst.msk [vmem:[%s378_s1 + $0x48] sm:$0x7f] %vm209_vm1, %v200_v8  ;;  %v199_v10 = vmax.f32 %v183_v9, 0.0  ;;  %v186_v11 = vmax.f32 %v113_v5, %v151_v16  ;;  %v152_v20 = vsel %vm134_vm0, %v150_v17, %v151_v16  ;;  %v115_v21 = vmax.f32 %v285_v12, %v81_v18 }
  0x9a   :  { %v185_v22 = vmax.f32 %v112_v6, %v152_v20  ;;  %v114_v23 = vmax.f32 %v287_v13, %v79_v19 }
  0x9b   :  { %217 = vst.msk [vmem:[%s378_s1 + $0x40] sm:$0xff] %vm207_vm2, %v199_v10  ;;  %v202_v24 = vmax.f32 %v186_v11, 0.0  ;;  %v154_v25 = vrot.slane %v115_v21, 1 }
  0x9c   :  { %v201_v26 = vmax.f32 %v185_v22, 0.0  ;;  %v153_v27 = vrot.slane %v114_v23, 1  ;;  %v85_v28 = vpop.permute.xlu1 %84  ;;  %v83_v29 = vpop.permute.xlu0 %82 }
  0x9d   :  { %220 = vst.msk [vmem:[%s378_s1 + $0x58] sm:$0x7f] %vm209_vm1, %v202_v24  ;;  %v188_v12 = vmax.f32 %v115_v21, %v154_v25  ;;  %v117_v30 = vmax.f32 %v291_v14, %v85_v28  ;;  %v116_v13 = vmax.f32 %v293_v15, %v83_v29 }
  0x9e   :  { %219 = vst.msk [vmem:[%s378_s1 + $0x50] sm:$0xff] %vm207_vm2, %v201_v26  ;;  %v155_v31 = vsel %vm134_vm0, %v153_v27, %v154_v25 }
  0x9f   :  { %v204_v32 = vmax.f32 %v188_v12, 0.0  ;;  %v187_v33 = vmax.f32 %v114_v23, %v155_v31  ;;  %v157_v34 = vrot.slane %v117_v30, 1  ;;  %v156_v35 = vrot.slane %v116_v13, 1 }
  0xa1   :  { %222 = vst.msk [vmem:[%s378_s1 + $0x68] sm:$0x7f] %vm209_vm1, %v204_v32  ;;  %v203_v36 = vmax.f32 %v187_v33, 0.0  ;;  %v190_v14 = vmax.f32 %v117_v30, %v157_v34  ;;  %v158_v15 = vsel %vm134_vm0, %v156_v35, %v157_v34 }
  0xa2   :  { %v189_v37 = vmax.f32 %v116_v13, %v158_v15 }
  0xa3   :  { %221 = vst.msk [vmem:[%s378_s1 + $0x60] sm:$0xff] %vm207_vm2, %v203_v36  ;;  %v206_v38 = vmax.f32 %v190_v14, 0.0 }
  0xa4   :  { %v205_v39 = vmax.f32 %v189_v37, 0.0 }
  0xa5   :  { %224 = vst.msk [vmem:[%s378_s1 + $0x78] sm:$0x7f] %vm209_vm1, %v206_v38 }
  0xa6   :  { %223 = vst.msk [vmem:[%s378_s1 + $0x70] sm:$0xff] %vm207_vm2, %v205_v39 }
  0xa7   :  { %229 = vsyncpa [#allocation3], 1 }

</bundles_post_ra>
